<compile_context>
chip_gen: v5e
topology: v5e:2x2
jax: 0.10.0
libtpu: 0.0.40
codegen_flags: <defaults>
</compile_context>

<pallas_src>
from typing import NamedTuple

import jax
import jax.numpy as jnp
from jax.experimental import pallas as pl
from jax.experimental.pallas import tpu as pltpu


def _round_up(a: int, b: int) -> int:
    return ((a + b - 1) // b) * b


def _vmem_limit_bytes() -> int:
    """Per-generation VMEM budget (leave ~25% headroom for compiler scratch)."""
    cap = 64 * 1024 * 1024
    try:
        info = pltpu.get_tpu_info()
        cap = int(getattr(info, "vmem_capacity_bytes", cap))
    except Exception:  # pragma: no cover - fall back to a conservative cap
        pass
    return (cap * 3) // 4


def _cast_all_linear_kernel(x_ref, w_ref, b_ref, o_ref, acc_ref):
    """One (tm, tn) output tile; K (hidden) is the last grid axis (P3 pattern)."""
    k = pl.program_id(2)

    @pl.when(k == 0)
    def _():
        acc_ref[...] = jnp.zeros_like(acc_ref)

    # cast_all(args, half -> f32) + f32 forward, realized as the MXU fast path:
    # bf16 inputs, f32 accumulation.  W (f32) was pre-split into bf16 hi/lo so
    # (optionally) two bf16 matmuls reproduce the f32 matmul to well within
    # bf16 output resolution.  Both matmuls feed ONE accumulator update.
    x = x_ref[...]  # bf16 tile fed straight to the MXU (no f32 materialization)
    if w_ref.shape[0] == 2:  # static (trace-time) branch: hi + lo
        acc_ref[...] += (
            jnp.dot(x, w_ref[0], preferred_element_type=jnp.float32)
            + jnp.dot(x, w_ref[1], preferred_element_type=jnp.float32)
        )
    else:  # hi only (fast path)
        acc_ref[...] += jnp.dot(x, w_ref[0], preferred_element_type=jnp.float32)

    @pl.when(k == pl.num_programs(2) - 1)
    def _():
        # Bias add in f32 and cast_all(ret, f32 -> half), once per output tile.
        o_ref[...] = (acc_ref[...] + b_ref[...]).astype(o_ref.dtype)


class PreparedLinear(NamedTuple):
    w_packed: jax.Array  # (S, Hp, Op) bf16; S=2 -> [hi, lo], S=1 -> [hi]
    b: jax.Array         # (1, Op) f32
    hidden: int          # original H
    out_dim: int         # original O
    tn: int
    tk: int


def prepare_linear_params(w_f32, b_f32, *, tn=512, tk=1024, full_precision=True):
    """One-time (parameter-load time) weight prep, hoisted off the forward path."""
    H, O = w_f32.shape
    Hp = _round_up(H, 128)   # K axis: lane axis of x tile / sublane of W tile
    Op = _round_up(O, 128)   # lane-dense output

    tk = min(tk, Hp)
    tn = min(tn, Op)
    # Keep >=2 N tiles when possible so the parallel axes really shard across
    # the two TensorCores on v7x (no-op on single-TC v5e/v6e).
    if Op // tn == 1 and Op % 256 == 0:
        tn = Op // 2

    Hp = _round_up(Hp, tk)
    Op = _round_up(Op, tn)

    if (Hp, Op) != (H, O):
        w_f32 = jnp.pad(w_f32, ((0, Hp - H), (0, Op - O)))
    b_f32 = jnp.reshape(b_f32, (1, -1)).astype(jnp.float32)
    if Op != O:
        b_f32 = jnp.pad(b_f32, ((0, 0), (0, Op - O)))

    # f32 -> bf16 hi/lo split, stacked so a single DMA stream feeds both halves.
    w_hi = w_f32.astype(jnp.bfloat16)
    if full_precision:
        w_lo = (w_f32 - w_hi.astype(jnp.float32)).astype(jnp.bfloat16)
        w_packed = jnp.stack([w_hi, w_lo], axis=0)
    else:
        w_packed = w_hi[None]

    return PreparedLinear(w_packed, b_f32, H, O, tn, tk)


def cast_to_float_all_linear(x_half, params: PreparedLinear, *, tm=512):
    """Forward of CastToFloatAll(Linear) under autocast.

    x_half : [R, H] bfloat16 (the autocast half dtype)
    params : PreparedLinear (pre-padded / pre-split weights, built once)
    returns: [R, O] bfloat16
    """
    R, H = x_half.shape
    S, Hp, Op = params.w_packed.shape
    tn, tk = params.tn, params.tk

    # Pick tm from the real row count when it is already tile-friendly, so no
    # activation padding pass is needed for aligned shapes.
    Rp = _round_up(R, 16)  # bf16 sublane packing
    tm = min(tm, Rp)
    Rp = _round_up(Rp, tm)
    if (Rp, Hp) != (R, H):
        x_half = jnp.pad(x_half, ((0, Rp - R), (0, Hp - H)))

    grid = (Rp // tm, Op // tn, Hp // tk)

    cost = pl.CostEstimate(
        flops=2 * S * Rp * Hp * Op,
        transcendentals=0,
        bytes_accessed=(Rp * Hp * 2 + S * Hp * Op * 2 + Op * 4 + Rp * Op * 2),
    )

    out_p = pl.pallas_call(
        _cast_all_linear_kernel,
        out_shape=jax.ShapeDtypeStruct((Rp, Op), x_half.dtype),
        grid_spec=pltpu.PrefetchScalarGridSpec(
            num_scalar_prefetch=0,
            grid=grid,
            in_specs=[
                pl.BlockSpec((tm, tk), lambda i, j, k: (i, k)),        # x
                pl.BlockSpec((S, tk, tn), lambda i, j, k: (0, k, j)),  # W hi/lo
                pl.BlockSpec((1, tn), lambda i, j, k: (0, j)),         # bias
            ],
            out_specs=pl.BlockSpec((tm, tn), lambda i, j, k: (i, j)),
            scratch_shapes=[pltpu.VMEM((tm, tn), jnp.float32)],
        ),
        compiler_params=pltpu.CompilerParams(
            dimension_semantics=("parallel", "parallel", "arbitrary"),
            vmem_limit_bytes=_vmem_limit_bytes(),
        ),
        cost_estimate=cost,
    )(x_half, params.w_packed, params.b)

    if (Rp, Op) != (R, params.out_dim):
        out_p = out_p[:R, : params.out_dim]
    return out_p


if __name__ == "__main__":
    key = jax.random.PRNGKey(0)
    kx, kw, kb = jax.random.split(key, 3)

    # Small demo shapes: rows = batch * seq.
    batch, seq, hidden, out_dim = 2, 64, 256, 256
    rows = batch * seq

    # Input arrives in the autocast half dtype (bfloat16 stands in for fp16).
    x_half = jax.random.normal(kx, (rows, hidden), dtype=jnp.float32).astype(
        jnp.bfloat16
    )

    # Deterministic inner-module (Linear) parameters, kept in float32.
    w_f32 = jax.random.normal(kw, (hidden, out_dim), dtype=jnp.float32) * (
        1.0 / jnp.sqrt(hidden)
    )
    b_f32 = jax.random.normal(kb, (1, out_dim), dtype=jnp.float32) * 0.1

    # One-time parameter prep (hoisted out of the per-call forward path).
    params = prepare_linear_params(w_f32, b_f32, full_precision=True)

    y = cast_to_float_all_linear(x_half, params)
    y = jax.block_until_ready(y)

    # Reference: same cast -> f32 compute -> cast-back path in plain JAX.
    y_ref = (
        jnp.dot(
            x_half.astype(jnp.float32),
            w_f32,
            precision=jax.lax.Precision.HIGHEST,
        )
        + b_f32
    ).astype(jnp.bfloat16)

    assert y.shape == (rows, out_dim)
    assert y.dtype == jnp.bfloat16
    assert jnp.allclose(
        y.astype(jnp.float32), y_ref.astype(jnp.float32), atol=2e-2, rtol=2e-2
    )

    print("KERNEL_OK")
</pallas_src>

<mosaic_0001>
module attributes {stable_mosaic.version = 11 : i64} {
  func.func @_cast_all_linear_kernel(%arg0: i32, %arg1: i32, %arg2: i32, %arg3: memref<128x256xbf16, #tpu.memory_space<vmem>>, %arg4: memref<2x256x128xbf16, #tpu.memory_space<vmem>>, %arg5: memref<1x128xf32, #tpu.memory_space<vmem>>, %arg6: memref<128x128xbf16, #tpu.memory_space<vmem>>, %arg7: memref<128x128xf32, #tpu.memory_space<vmem>>) attributes {dimension_semantics = [#tpu.dimension_semantics<parallel>, #tpu.dimension_semantics<parallel>, #tpu.dimension_semantics<arbitrary>], iteration_bounds = array<i64: 1, 2, 1>, scalar_prefetch = 0 : i64, scratch_operands = 1 : i64, tpu.core_type = #tpu.core_type<tc>, window_params = [{transform_indices = @transform_0, window_bounds = array<i64: 128, 256>}, {transform_indices = @transform_1, window_bounds = array<i64: 2, 256, 128>}, {transform_indices = @transform_2, window_bounds = array<i64: 1, 128>}, {transform_indices = @transform_3, window_bounds = array<i64: 128, 128>}]} {
    %c0_i32 = arith.constant 0 : i32
    %0 = arith.cmpi eq, %arg2, %c0_i32 : i32
    %1 = arith.extui %0 : i1 to i32
    %c0_i32_0 = arith.constant 0 : i32
    %2 = arith.cmpi ne, %1, %c0_i32_0 : i32
    scf.if %2 {
      %cst_14 = arith.constant 0.000000e+00 : f32
      %17 = vector.broadcast %cst_14 : f32 to vector<128x128xf32>
      %c0_15 = arith.constant 0 : index
      %c0_16 = arith.constant 0 : index
      %18 = vector.load %arg7[%c0_15, %c0_16] : memref<128x128xf32, #tpu.memory_space<vmem>>, vector<128x128xf32>
      tpu.vector_store %arg7[%c0_15, %c0_16], %17 {strides = array<i32>} : memref<128x128xf32, #tpu.memory_space<vmem>>, vector<128x128xf32>,
    } else {
    }
    %c0 = arith.constant 0 : index
    %c0_1 = arith.constant 0 : index
    %3 = vector.load %arg3[%c0, %c0_1] : memref<128x256xbf16, #tpu.memory_space<vmem>>, vector<128x256xbf16>
    %c0_2 = arith.constant 0 : index
    %c0_3 = arith.constant 0 : index
    %4 = vector.load %arg7[%c0_2, %c0_3] : memref<128x128xf32, #tpu.memory_space<vmem>>, vector<128x128xf32>
    %c0_4 = arith.constant 0 : index
    %c0_5 = arith.constant 0 : index
    %c0_6 = arith.constant 0 : index
    %5 = vector.load %arg4[%c0_4, %c0_5, %c0_6] : memref<2x256x128xbf16, #tpu.memory_space<vmem>>, vector<1x256x128xbf16>
    %6 = vector.shape_cast %5 : vector<1x256x128xbf16> to vector<256x128xbf16>
    %cst = arith.constant dense<0.000000e+00> : vector<128x128xf32>
    %7 = tpu.matmul %3, %6, %cst {dimension_numbers = #tpu.dot_dimension_numbers<[1], [0], [0], [1], [0, 0, 1, 1], [], []>} : vector<128x256xbf16>, vector<256x128xbf16>, vector<128x128xf32> -> vector<128x128xf32>
    %c1 = arith.constant 1 : index
    %c0_7 = arith.constant 0 : index
    %c0_8 = arith.constant 0 : index
    %8 = vector.load %arg4[%c1, %c0_7, %c0_8] : memref<2x256x128xbf16, #tpu.memory_space<vmem>>, vector<1x256x128xbf16>
    %9 = vector.shape_cast %8 : vector<1x256x128xbf16> to vector<256x128xbf16>
    %cst_9 = arith.constant dense<0.000000e+00> : vector<128x128xf32>
    %10 = tpu.matmul %3, %9, %cst_9 {dimension_numbers = #tpu.dot_dimension_numbers<[1], [0], [0], [1], [0, 0, 1, 1], [], []>} : vector<128x256xbf16>, vector<256x128xbf16>, vector<128x128xf32> -> vector<128x128xf32>
    %11 = arith.addf %7, %10 : vector<128x128xf32>
    %12 = arith.addf %4, %11 : vector<128x128xf32>
    %c0_10 = arith.constant 0 : index
    %c0_11 = arith.constant 0 : index
    %13 = vector.load %arg7[%c0_10, %c0_11] : memref<128x128xf32, #tpu.memory_space<vmem>>, vector<128x128xf32>
    tpu.vector_store %arg7[%c0_10, %c0_11], %12 {strides = array<i32>} : memref<128x128xf32, #tpu.memory_space<vmem>>, vector<128x128xf32>,
    %c0_i32_12 = arith.constant 0 : i32
    %14 = arith.cmpi eq, %arg2, %c0_i32_12 : i32
    %15 = arith.extui %14 : i1 to i32
    %c0_i32_13 = arith.constant 0 : i32
    %16 = arith.cmpi ne, %15, %c0_i32_13 : i32
    scf.if %16 {
      %c0_14 = arith.constant 0 : index
      %c0_15 = arith.constant 0 : index
      %17 = vector.load %arg7[%c0_14, %c0_15] : memref<128x128xf32, #tpu.memory_space<vmem>>, vector<128x128xf32>
      %c0_16 = arith.constant 0 : index
      %c0_17 = arith.constant 0 : index
      %18 = vector.load %arg5[%c0_16, %c0_17] : memref<1x128xf32, #tpu.memory_space<vmem>>, vector<1x128xf32>
      %19 = vector.broadcast %18 : vector<1x128xf32> to vector<128x128xf32>
      %20 = arith.addf %17, %19 : vector<128x128xf32>
      %21 = arith.truncf %20 : vector<128x128xf32> to vector<128x128xbf16>
      %c0_18 = arith.constant 0 : index
      %c0_19 = arith.constant 0 : index
      %22 = vector.load %arg6[%c0_18, %c0_19] : memref<128x128xbf16, #tpu.memory_space<vmem>>, vector<128x128xbf16>
      tpu.vector_store %arg6[%c0_18, %c0_19], %21 {strides = array<i32>} : memref<128x128xbf16, #tpu.memory_space<vmem>>, vector<128x128xbf16>,
    } else {
    }
    return
  }
  func.func @transform_0(%arg0: i32, %arg1: i32, %arg2: i32) -> (i32, i32) {
    %c0_i32 = arith.constant 0 : i32
    return %arg0, %arg2 : i32, i32
  }
  func.func @transform_1(%arg0: i32, %arg1: i32, %arg2: i32) -> (i32, i32, i32) {
    %c0_i32 = arith.constant 0 : i32
    %c0_i32_0 = arith.constant 0 : i32
    return %c0_i32, %arg2, %arg1 : i32, i32, i32
  }
  func.func @transform_2(%arg0: i32, %arg1: i32, %arg2: i32) -> (i32, i32) {
    %c0_i32 = arith.constant 0 : i32
    %c0_i32_0 = arith.constant 0 : i32
    return %c0_i32, %arg1 : i32, i32
  }
  func.func @transform_3(%arg0: i32, %arg1: i32, %arg2: i32) -> (i32, i32) {
    %c0_i32 = arith.constant 0 : i32
    return %arg0, %arg1 : i32, i32
  }
}

</mosaic_0001>

<bundles_post_ra>
// kernel: tpu_custom_call.1
= control target key start
LH: loop header
LB: loop body
LE: loop exit
PB: predicated region body
PF: predicated region fallthrough
CT: control target
= control target key end

     0   :  { %8 = vsyncpa [#allocation4], 0  ;;  %s1977_s0 = inlined_call_operand.hbm [shape: bf16[128,256], index: 0, kind: input, shape index: {}]   ;;  %s1978_s1 = inlined_call_operand.hbm [shape: bf16[2,256,256], index: 1, kind: input, shape index: {}]   ;;  %s1979_s2 = inlined_call_operand.hbm [shape: f32[1,256], index: 2, kind: input, shape index: {}]   ;;  %s1980_s3 = inlined_call_operand.hbm [shape: bf16[128,256], index: 3, kind: output, shape index: {}]  }
   0x1   :  { %9 = vsyncpa [#allocation7], 0 }
   0x2   :  { %11 = vsyncpa [#allocation7 + $0x1], 0 }
   0x3   :  { %12 = vsyncpa [#allocation5], 0 }
   0x4   :  { %14 = vsyncpa [#allocation5 + $0x1], 0  ;;  %s1735_s12 = smov 0   ;;  %s1737_s13 = smov 0  }
   0x5   :  { %s1739_s14 = smov 0   ;;  %s1741_s15 = smov 0  }
   0x6   :  { %s1743_s16 = smov 0   ;;  %s1745_s17 = smov 0  }
   0x7 LB: > { %s35_s18 = sadd.s32 1, %s1701_s16  ;;  %s76_s19 = sadd.s32 1, %s1693_s14  ;;  %s1705_s17 = sphi %s1745_s17, %s20_s17   ;;  %s1701_s16 = sphi %s1743_s16, %s1991_s16   ;;  %s1697_s15 = sphi %s1741_s15, %s1990_s15   ;;  %s1693_s14 = sphi %s1739_s14, %s1989_s14   ;;  %s1689_s13 = sphi %s1737_s13, %s1988_s13   ;;  %s1685_s12 = sphi %s1735_s12, %s1987_s12  }
   0x8   : > { %p37_p0 = scmp.ge.s32.totalorder %s35_s18, 2  ;;  %p83_p1 = scmp.ne.s32.totalorder %s1693_s14, %s1689_s13 }
   0x9   : > { %p84_p2 = scmp.eq.s32.totalorder %s1705_s17, 0  ;;  %p1113_p4 = scmp.ge.s32.totalorder %s1705_s17, 2 }
   0xa   : > { %s1993_s18 = smov (%p37_p0, %s35_s18), 0  ;;  %p1469_p5 = scmp.lt.s32.totalorder %s1705_s17, 2 }
   0xb   : > { %p1775_p3 = por %p84_p2, %p83_p1  ;;  %s72_s21 = ssub.s32 %s1701_s16, %s1993_s18 }
   0xc   : > { %p74_p6 = scmp.eq.s32.totalorder %s72_s21, 0  ;;  %s187_s22 = sand.u32 1, %s1705_s17  }
   0xd   : > { %s189_s23 = sand.u32 1, %s1693_s14   ;;  %s1115_s26 = sshll.u32 %s1701_s16, 2 }
   0xe   : > { %s1786_s24 = scalar_select %p74_p6, %s1693_s14, %s76_s19  }
   0xf   : > { %s1114_s25 = sshll.u32 %s189_s23, 8  ;;  %s198_s29 = scalar_lea.hbm %s1978_s1, %s1115_s26 }
  0x10   : > { %s199_s30 = sshll.u32 %s198_s29, 4  ;;  %s191_s4 = scalar_lea.vmem [#allocation6], %s1114_s25  ;;  %s200_s30 = int_to_ptr.hbm [resolvable:$true] %s199_s30 }
  0x11   : > { %s201_s5 = sshll.u32 %s191_s4, 4  ;;  %p1798_p7 = pnand %p1469_p5, %p1775_p3  ;;  %s202_s5 = int_to_ptr.vmem [resolvable:$true] %s201_s5 }
  0x12   : > { %s1802_s7 = scalar_lea.sflag [#allocation7], %s187_s22  ;;  %s1707_s8 = smov 128  }
  0x13   : > { %s1708_s9 = smov 64   ;;  %s1709_s10 = smov 4  }
  0x14   : > { %1460 = dma.hbm_to_vmem [thread:$0]  (!%p1798_p7), %s200_s30, 4096, %s202_s5, %s1802_s7, %s1707_s8, %s1708_s9, %s1709_s10  }
  0x15   : > { %s1809_s11 = sadd.s32 4294967295, %s1705_s17   ;;  %s1110_s19 = sadd.s32 4294967294, %s1705_s17  }
  0x16   : > { %p89_p8 = scmp.ne.s32.totalorder %s1689_s13, %s1685_s12  ;;  %p90_p9 = scmp.eq.s32.totalorder %s1809_s11, 0 }
  0x17   : > { %p141_p10 = scmp.eq.s32.totalorder %s1809_s11, 1  ;;  %p147_p11 = scmp.eq.s32.totalorder %s1110_s19, 1 }
  0x18   : > { %p1818_p12 = por %p90_p9, %p89_p8  ;;  %p1111_p13 = scmp.ge.s32.totalorder %s1705_s17, 1 }
  0x19   : > { %p1826_p0 = por %p141_p10, %p83_p1  ;;  %p1830_p2 = por %p147_p11, %p89_p8 }
  0x1a   : > { %p154_p3 = scmp.lt.s32.totalorder %s1705_s17, 3  ;;  %s171_s27 = sshll.u32 %s1977_s0, 4  ;;  %s172_s27 = int_to_ptr.hbm [resolvable:$true] %s171_s27 }
  0x1b   : > { %s1710_s29 = smov [#allocation3]   ;;  %s217_s9 = scalar_lea.hbm %s1979_s2, %s1701_s16 }
  0x1c   : > { %p1838_p5 = pnand %p1111_p13, %p154_p3  ;;  %s173_s30 = sshll.u32 %s1710_s29, 4  ;;  %s174_s30 = int_to_ptr.vmem [resolvable:$true] %s173_s30 }
  0x1d   : > { %s219_s10 = sshll.u32 %s217_s9, 4  ;;  %s214_s19 = scalar_lea.vmem [#allocation8], %s189_s23  ;;  %s220_s10 = int_to_ptr.hbm [resolvable:$true] %s219_s10 }
  0x1e   : > { %p1453_p1 = pneg %p1838_p5  ;;  %s221_s25 = sshll.u32 %s214_s19, 4  ;;  %s222_s25 = int_to_ptr.vmem [resolvable:$true] %s221_s25 }
  0x1f   : > { %s1711_s26 = smov 8   ;;  %230 = sbr.rel (%p1838_p5) target bundleno = 340 (0x154), region = 32 }
  0x20   : > { %p1454_p6 = pnand %p1453_p1, %p90_p9 }
  0x21   : > { %1463 = dma.hbm_to_vmem [thread:$0]  (!%p1798_p7), %s220_s10, 16, %s222_s25, %s1802_s7  }
  0x22   : > { %1456 = dma.hbm_to_vmem [thread:$0]  (!%p1454_p6), %s172_s27, 2048, %s174_s30, [#allocation4], %s1707_s8, %s1707_s8, %s1711_s26  }
  0x24   : > { %1672 = dma.done.wait (%p90_p9), [#allocation4], 2048  }
  0x25   : > { %1674 = vsyncadd (%p90_p9), [#allocation4], 4294965248  ;;  %s237_s23 = sand.u32 1, %s1809_s11   ;;  %s1865_s29 = sand.u32 1, %s1689_s13  }
  0x26   : > { %s1118_s4 = sshll.u32 %s1865_s29, 8  ;;  %s238_s8 = scalar_lea.sflag [#allocation7], %s237_s23 }
  0x27   : > { %s1868_s6 = scalar_lea.vmem [#allocation6], %s1118_s4 }
  0x28   : > { %1676 = dma.done.wait (%p1818_p12), %s238_s8, 4112  }
  0x29   : > { %1678 = vsyncadd (%p1818_p12), %s238_s8, 4294963184  ;;  %v1387_v0 = vld [vmem:[%s1868_s6 + $0xb8] sm:$0xff]  ;;  %v1386_v4 = vld [vmem:[%s1868_s6 + $0xb0] sm:$0xff]  ;;  %s250_s7 = scalar_lea.vmem [#allocation8], %s1865_s29  ;;  %s1119_s11 = sshll.u32 %s1865_s29, 6 }
  0x2a   : > { %v1395_v1 = vld [vmem:[%s1868_s6 + $0xf8] sm:$0xff]  ;;  %575 = vmatpush.bf16.msra.mxu0 %v1387_v0  ;;  %v1394_v5 = vld [vmem:[%s1868_s6 + $0xf0] sm:$0xff]  ;;  %v1385_v8 = vld [vmem:[%s1868_s6 + $0xa8] sm:$0xff]  ;;  %s1914_s20 = scalar_lea.vmem [#allocation9], %s1119_s11  ;;  %s1345_s27 = sshll.u32 %s1697_s15, 2 }
  0x2b   : > { %v1371_v2 = vld [vmem:[%s1868_s6 + $0x38] sm:$0xff]  ;;  %624 = vmatpush.bf16.msra.mxu1 %v1395_v1  ;;  %v1370_v6 = vld [vmem:[%s1868_s6 + $0x30] sm:$0xff]  ;;  %v1393_v9 = vld [vmem:[%s1868_s6 + $0xe8] sm:$0xff]  ;;  %s984_s5 = scalar_lea.hbm %s1980_s3, %s1345_s27  ;;  %s985_s9 = sshll.u32 %s1914_s20, 4  ;;  %s986_s9 = int_to_ptr.vmem [resolvable:$true] %s985_s9 }
  0x2c   : > { %v1379_v3 = vld [vmem:[%s1868_s6 + $0x78] sm:$0xff]  ;;  %769 = vmatpush.bf16.msra.mxu2 %v1371_v2  ;;  %v1378_v7 = vld [vmem:[%s1868_s6 + $0x70] sm:$0xff]  ;;  %v1369_v10 = vld [vmem:[%s1868_s6 + $0x28] sm:$0xff]  ;;  %s987_s10 = sshll.u32 %s984_s5, 4  ;;  %s971_s15 = scalar_lea.sflag [#allocation5], %s1865_s29  ;;  %s988_s10 = int_to_ptr.hbm [resolvable:$true] %s987_s10 }
  0x2d   : > { %818 = vmatpush.bf16.msra.mxu3 %v1379_v3  ;;  %v1377_v11 = vld [vmem:[%s1868_s6 + $0x68] sm:$0xff]  ;;  %v1384_v12 = vld [vmem:[%s1868_s6 + $0xa0] sm:$0xff]  ;;  %v1383_v16 = vld [vmem:[%s1868_s6 + $0x98] sm:$0xff]  ;;  %s1633_s19 = sshra.s32 %s988_s10, 4  ;;  %s1639_s4 = scalar_lea.hbm %s1980_s3, 128  ;;  %s1634_s19 = int_to_ptr.hbm [resolvable:$true] %s1633_s19 }
  0x2e   : > { %576 = vmatpush.bf16.msra.mxu0 %v1386_v4  ;;  %v1392_v13 = vld [vmem:[%s1868_s6 + $0xe0] sm:$0xff]  ;;  %v1391_v17 = vld [vmem:[%s1868_s6 + $0xd8] sm:$0xff]  ;;  %v1382_v20 = vld [vmem:[%s1868_s6 + $0x90] sm:$0xff]  ;;  %s1635_s25 = scalar_lea.hbm %s1634_s19, 64  ;;  %p1640_p10 = scmp.lt.s32.totalorder %s1634_s19, %s1980_s3 }
  0x2f   : > { %625 = vmatpush.bf16.msra.mxu1 %v1394_v5  ;;  %v1368_v14 = vld [vmem:[%s1868_s6 + $0x20] sm:$0xff]  ;;  %v1367_v18 = vld [vmem:[%s1868_s6 + $0x18] sm:$0xff]  ;;  %v1390_v21 = vld [vmem:[%s1868_s6 + $0xd0] sm:$0xff]  ;;  %p1636_p7 = scmp.ne.s32.totalorder %s1634_s19, %s1635_s25  ;;  %p1641_p11 = scmp.lt.s32.totalorder %s1639_s4, %s1635_s25 }
  0x30   : > { %770 = vmatpush.bf16.msra.mxu2 %v1370_v6  ;;  %v1376_v15 = vld [vmem:[%s1868_s6 + $0x60] sm:$0xff]  ;;  %v1375_v19 = vld [vmem:[%s1868_s6 + $0x58] sm:$0xff]  ;;  %v1366_v22 = vld [vmem:[%s1868_s6 + $0x10] sm:$0xff] }
  0x31   : > { %819 = vmatpush.bf16.msra.mxu3 %v1378_v7  ;;  %v1374_v23 = vld [vmem:[%s1868_s6 + $0x50] sm:$0xff]  ;;  %v1381_v24 = vld [vmem:[%s1868_s6 + $0x88] sm:$0xff]  ;;  %v1380_v28 = vld [vmem:[%s1868_s6 + $0x80] sm:$0xff]  ;;  %p1637_p8 = pnand %p1636_p7, %p1826_p0  ;;  %p1642_p12 = por %p1641_p11, %p1640_p10 }
  0x32   : > { %577 = vmatpush.bf16.msra.mxu0 %v1385_v8  ;;  %v1389_v25 = vld [vmem:[%s1868_s6 + $0xc8] sm:$0xff]  ;;  %v1388_v29 = vld [vmem:[%s1868_s6 + $0xc0] sm:$0xff]  ;;  %v1162_v38 = vld [vmem:[#allocation3 + $0x10] sm:$0xf] }
  0x33   : > { %626 = vmatpush.bf16.msra.mxu1 %v1393_v9  ;;  %v1365_v26 = vld [vmem:[%s1868_s6 + $0x8] sm:$0xff]  ;;  %v1154_v30 = vld [vmem:[#allocation3] sm:$0xf]  ;;  %v1348_v32 = vld [vmem:[#allocation3 + $0x4] sm:$0xf]  ;;  %p1638_p9 = pneg %p1637_p8 }
  0x34   : > { %771 = vmatpush.bf16.msra.mxu2 %v1369_v10  ;;  %v1373_v27 = vld [vmem:[%s1868_s6 + $0x48] sm:$0xff]  ;;  %v1364_v34 = vld [vmem:[%s1868_s6] sm:$0xff]  ;;  %v1351_v39 = vld [vmem:[#allocation3 + $0x14] sm:$0xf0] }
  0x35   : > { %820 = vmatpush.bf16.msra.mxu3 %v1377_v11  ;;  %v1349_v31 = vld [vmem:[#allocation3 + $0x4] sm:$0xf0]  ;;  %v1156_v33 = vld [vmem:[#allocation3 + $0x8] sm:$0xf0]  ;;  %v1372_v35 = vld [vmem:[%s1868_s6 + $0x40] sm:$0xff]  ;;  %v1163_v42 = vor.u32 %v1351_v39, %v1162_v38  ;;  %p1643_p13 = pnand %p1642_p12, %p1638_p9 }
  0x36   : > { %578 = vmatpush.bf16.msra.mxu0 %v1384_v12  ;;  %v1155_v36 = vor.u32 %v1349_v31, %v1154_v30  ;;  %v1159_v37 = vor.u32 %v1348_v32, %v1156_v33  ;;  %v1350_v40 = vld [vmem:[#allocation3 + $0x14] sm:$0xf]  ;;  %v1164_v41 = vld [vmem:[#allocation3 + $0x18] sm:$0xf0]  ;;  %v1170_v44 = vld [vmem:[#allocation3 + $0x20] sm:$0xf] }
  0x37   : > { %627 = vmatpush.bf16.msra.mxu1 %v1392_v13  ;;  %v1167_v43 = vor.u32 %v1350_v40, %v1164_v41  ;;  %v1353_v45 = vld [vmem:[#allocation3 + $0x24] sm:$0xf0]  ;;  %v1352_v46 = vld [vmem:[#allocation3 + $0x24] sm:$0xf]  ;;  %v1172_v47 = vld [vmem:[#allocation3 + $0x28] sm:$0xf0] }
  0x38   : > { %772 = vmatpush.bf16.msra.mxu2 %v1368_v14  ;;  %v1171_v48 = vor.u32 %v1353_v45, %v1170_v44  ;;  %v1175_v49 = vor.u32 %v1352_v46, %v1172_v47  ;;  %v1178_v50 = vld [vmem:[#allocation3 + $0x30] sm:$0xf]  ;;  %v1355_v51 = vld [vmem:[#allocation3 + $0x34] sm:$0xf0]  ;;  %v1354_v52 = vld [vmem:[#allocation3 + $0x34] sm:$0xf] }
  0x39   : > { %821 = vmatpush.bf16.msra.mxu3 %v1376_v15  ;;  %v1180_v53 = vld [vmem:[#allocation3 + $0x38] sm:$0xf0]  ;;  %v1179_v54 = vor.u32 %v1355_v51, %v1178_v50  ;;  %v1186_v56 = vld [vmem:[#allocation3 + $0x40] sm:$0xf]  ;;  %v1357_v57 = vld [vmem:[#allocation3 + $0x44] sm:$0xf0] }
  0x3a   : > { %579 = vmatpush.bf16.msra.mxu0 %v1383_v16  ;;  %v1183_v55 = vor.u32 %v1354_v52, %v1180_v53  ;;  %v1356_v58 = vld [vmem:[#allocation3 + $0x44] sm:$0xf]  ;;  %v1188_v59 = vld [vmem:[#allocation3 + $0x48] sm:$0xf0]  ;;  %v1187_v60 = vor.u32 %v1357_v57, %v1186_v56  ;;  %v1194_v62 = vld [vmem:[#allocation3 + $0x50] sm:$0xf] }
  0x3b   : > { %628 = vmatpush.bf16.msra.mxu1 %v1391_v17  ;;  %v1191_v61 = vor.u32 %v1356_v58, %v1188_v59  ;;  %v1359_v63 = vld [vmem:[#allocation3 + $0x54] sm:$0xf0]  ;;  %v1358_v0 = vld [vmem:[#allocation3 + $0x54] sm:$0xf]  ;;  %v1196_v1 = vld [vmem:[#allocation3 + $0x58] sm:$0xf0] }
  0x3c   : > { %773 = vmatpush.bf16.msra.mxu2 %v1367_v18  ;;  %v1195_v2 = vor.u32 %v1359_v63, %v1194_v62  ;;  %v1199_v3 = vor.u32 %v1358_v0, %v1196_v1  ;;  %v1202_v4 = vld [vmem:[#allocation3 + $0x60] sm:$0xf]  ;;  %v1361_v5 = vld [vmem:[#allocation3 + $0x64] sm:$0xf0]  ;;  %v1360_v6 = vld [vmem:[#allocation3 + $0x64] sm:$0xf] }
  0x3d   : > { %822 = vmatpush.bf16.msra.mxu3 %v1375_v19  ;;  %v1204_v7 = vld [vmem:[#allocation3 + $0x68] sm:$0xf0]  ;;  %v1203_v8 = vor.u32 %v1361_v5, %v1202_v4  ;;  %v1210_v10 = vld [vmem:[#allocation3 + $0x70] sm:$0xf]  ;;  %v1363_v11 = vld [vmem:[#allocation3 + $0x74] sm:$0xf0] }
  0x3e   : > { %580 = vmatpush.bf16.msra.mxu0 %v1382_v20  ;;  %v1207_v9 = vor.u32 %v1360_v6, %v1204_v7  ;;  %v1362_v12 = vld [vmem:[#allocation3 + $0x74] sm:$0xf]  ;;  %v1212_v13 = vld [vmem:[#allocation3 + $0x78] sm:$0xf0]  ;;  %v1211_v14 = vor.u32 %v1363_v11, %v1210_v10 }
  0x3f   : > { %629 = vmatpush.bf16.msra.mxu1 %v1390_v21  ;;  %v1215_v15 = vor.u32 %v1362_v12, %v1212_v13 }
  0x40   : > { %774 = vmatpush.bf16.msra.mxu2 %v1366_v22 }
  0x41   : > { %823 = vmatpush.bf16.msra.mxu3 %v1374_v23 }
  0x42   : > { %581 = vmatpush.bf16.msra.mxu0 %v1381_v24 }
  0x43   : > { %630 = vmatpush.bf16.msra.mxu1 %v1389_v25 }
  0x44   : > { %775 = vmatpush.bf16.msra.mxu2 %v1365_v26 }
  0x45   : > { %824 = vmatpush.bf16.msra.mxu3 %v1373_v27 }
  0x46   : > { %582 = vmatpush.bf16.msra.mxu0 %v1380_v28  ;;  %v1909_v28 = vld [vmem:[%s250_s7] ss:$0 sm:$0xff] }
  0x47   : > { %631 = vmatpush.bf16.msra.mxu1 %v1388_v29 }
  0x48   : > { %776 = vmatpush.bf16.msra.mxu2 %v1364_v34 }
  0x49   : > { %825 = vmatpush.bf16.msra.mxu3 %v1372_v35  ;;  %583 = vmatmul.bf16.vlgmr.msra.gmra.mxu0 %v1155_v36 }
  0x4a   : > { %632 = vmatmul.bf16.vlgmr.msra.gmra.mxu1 %v1159_v37 }
  0x4b   : > { %777 = vmatmul.bf16.vlgmr.msra.gmra.mxu2 %v1155_v36 }
  0x4c   : > { %826 = vmatmul.bf16.vlgmr.msra.gmra.mxu3 %v1159_v37 }
  0x59   : > { %588 = vmatmul.bf16.gmra.mxu0 %v1163_v42 }
  0x5a   : > { %637 = vmatmul.bf16.gmra.mxu1 %v1167_v43 }
  0x5b   : > { %782 = vmatmul.bf16.gmra.mxu2 %v1163_v42 }
  0x5c   : > { %831 = vmatmul.bf16.gmra.mxu3 %v1167_v43 }
  0x69   : > { %593 = vmatmul.bf16.gmra.mxu0 %v1171_v48 }
  0x6a   : > { %642 = vmatmul.bf16.gmra.mxu1 %v1175_v49 }
  0x6b   : > { %787 = vmatmul.bf16.gmra.mxu2 %v1171_v48 }
  0x6c   : > { %836 = vmatmul.bf16.gmra.mxu3 %v1175_v49 }
  0x79   : > { %598 = vmatmul.bf16.gmra.mxu0 %v1179_v54 }
  0x7a   : > { %647 = vmatmul.bf16.gmra.mxu1 %v1183_v55 }
  0x7b   : > { %792 = vmatmul.bf16.gmra.mxu2 %v1179_v54 }
  0x7c   : > { %841 = vmatmul.bf16.gmra.mxu3 %v1183_v55 }
  0x89   : > { %603 = vmatmul.bf16.gmra.mxu0 %v1187_v60 }
  0x8a   : > { %652 = vmatmul.bf16.gmra.mxu1 %v1191_v61 }
  0x8b   : > { %797 = vmatmul.bf16.gmra.mxu2 %v1187_v60 }
  0x8c   : > { %846 = vmatmul.bf16.gmra.mxu3 %v1191_v61 }
  0x99   : > { %608 = vmatmul.bf16.gmra.mxu0 %v1195_v2 }
  0x9a   : > { %657 = vmatmul.bf16.gmra.mxu1 %v1199_v3 }
  0x9b   : > { %802 = vmatmul.bf16.gmra.mxu2 %v1195_v2 }
  0x9c   : > { %851 = vmatmul.bf16.gmra.mxu3 %v1199_v3 }
  0xa9   : > { %613 = vmatmul.bf16.gmra.mxu0 %v1203_v8 }
  0xaa   : > { %662 = vmatmul.bf16.gmra.mxu1 %v1207_v9 }
  0xab   : > { %807 = vmatmul.bf16.gmra.mxu2 %v1203_v8 }
  0xac   : > { %856 = vmatmul.bf16.gmra.mxu3 %v1207_v9 }
  0xb9   : > { %618 = vmatmul.bf16.gmra.mxu0 %v1211_v14 }
  0xba   : > { %667 = vmatmul.bf16.gmra.mxu1 %v1215_v15 }
  0xbb   : > { %812 = vmatmul.bf16.gmra.mxu2 %v1211_v14 }
  0xbc   : > { %861 = vmatmul.bf16.gmra.mxu3 %v1215_v15 }
  0xc6   : > { %v584_v16 = vpop.f32.mrf.mxu0 }
  0xc7   : > { %v633_v17 = vpop.f32.mrf.mxu1 }
  0xc8   : > { %v634_v20 = vadd.f32 %v633_v17, %v584_v16 }
  0xce   : > { %v778_v18 = vpop.f32.mrf.mxu2  ;;  %v586_v21 = vpop.f32.mrf.mxu0 }
  0xcf   : > { %v827_v19 = vpop.f32.mrf.mxu3  ;;  %v635_v22 = vpop.f32.mrf.mxu1  ;;  %v779_v23 = vadd.f32 %v778_v18, %v634_v20 }
  0xd0   : > { %v636_v24 = vadd.f32 %v635_v22, %v586_v21 }
  0xd1   : > { %v828_v27 = vadd.f32 %v827_v19, %v779_v23 }
  0xd3   : > { %v922_v33 = vadd.f32 %v1909_v28, %v828_v27 }
  0xd6   : > { %v780_v25 = vpop.f32.mrf.mxu2  ;;  %v589_v30 = vpop.f32.mrf.mxu0 }
  0xd7   : > { %v829_v26 = vpop.f32.mrf.mxu3  ;;  %v781_v29 = vadd.f32 %v780_v25, %v636_v24  ;;  %v638_v31 = vpop.f32.mrf.mxu1 }
  0xd8   : > { %v639_v38 = vadd.f32 %v638_v31, %v589_v30 }
  0xd9   : > { %v830_v32 = vadd.f32 %v829_v26, %v781_v29 }
  0xdb   : > { %v923_v34 = vadd.f32 %v1909_v28, %v830_v32 }
  0xdd   : > { %v1399_v35 = vpack.c.bf16 %v923_v34, %v922_v33 }
  0xde   : > { %v783_v36 = vpop.f32.mrf.mxu2  ;;  %v591_v39 = vpop.f32.mrf.mxu0 }
  0xdf   : > { %v832_v37 = vpop.f32.mrf.mxu3  ;;  %1400 = vst [vmem:[%s1914_s20] sm:$0xff] %v1399_v35   ;;  %v640_v40 = vpop.f32.mrf.mxu1  ;;  %v784_v41 = vadd.f32 %v783_v36, %v639_v38 }
  0xe0   : > { %v641_v42 = vadd.f32 %v640_v40, %v591_v39 }
  0xe1   : > { %v833_v45 = vadd.f32 %v832_v37, %v784_v41 }
  0xe3   : > { %v924_v50 = vadd.f32 %v1909_v28, %v833_v45 }
  0xe6   : > { %v785_v43 = vpop.f32.mrf.mxu2  ;;  %v594_v47 = vpop.f32.mrf.mxu0 }
  0xe7   : > { %v834_v44 = vpop.f32.mrf.mxu3  ;;  %v786_v46 = vadd.f32 %v785_v43, %v641_v42  ;;  %v643_v48 = vpop.f32.mrf.mxu1 }
  0xe8   : > { %v644_v55 = vadd.f32 %v643_v48, %v594_v47 }
  0xe9   : > { %v835_v49 = vadd.f32 %v834_v44, %v786_v46 }
  0xeb   : > { %v925_v51 = vadd.f32 %v1909_v28, %v835_v49 }
  0xed   : > { %v1404_v52 = vpack.c.bf16 %v925_v51, %v924_v50 }
  0xee   : > { %v788_v53 = vpop.f32.mrf.mxu2  ;;  %v596_v56 = vpop.f32.mrf.mxu0 }
  0xef   : > { %v837_v54 = vpop.f32.mrf.mxu3  ;;  %1436 = vst [vmem:[%s1914_s20 + $0x8] sm:$0xff] %v1404_v52   ;;  %v645_v57 = vpop.f32.mrf.mxu1  ;;  %v789_v58 = vadd.f32 %v788_v53, %v644_v55 }
  0xf0   : > { %v646_v59 = vadd.f32 %v645_v57, %v596_v56 }
  0xf1   : > { %v838_v62 = vadd.f32 %v837_v54, %v789_v58 }
  0xf3   : > { %v926_v3 = vadd.f32 %v1909_v28, %v838_v62 }
  0xf6   : > { %v790_v60 = vpop.f32.mrf.mxu2  ;;  %v599_v0 = vpop.f32.mrf.mxu0 }
  0xf7   : > { %v839_v61 = vpop.f32.mrf.mxu3  ;;  %v791_v63 = vadd.f32 %v790_v60, %v646_v59  ;;  %v648_v1 = vpop.f32.mrf.mxu1 }
  0xf8   : > { %v649_v8 = vadd.f32 %v648_v1, %v599_v0 }
  0xf9   : > { %v840_v2 = vadd.f32 %v839_v61, %v791_v63 }
  0xfb   : > { %v927_v4 = vadd.f32 %v1909_v28, %v840_v2 }
  0xfd   : > { %v1409_v5 = vpack.c.bf16 %v927_v4, %v926_v3 }
  0xfe   : > { %v793_v6 = vpop.f32.mrf.mxu2  ;;  %v601_v9 = vpop.f32.mrf.mxu0 }
  0xff   : > { %v842_v7 = vpop.f32.mrf.mxu3  ;;  %1437 = vst [vmem:[%s1914_s20 + $0x10] sm:$0xff] %v1409_v5   ;;  %v650_v10 = vpop.f32.mrf.mxu1  ;;  %v794_v11 = vadd.f32 %v793_v6, %v649_v8 }
 0x100   : > { %v651_v12 = vadd.f32 %v650_v10, %v601_v9 }
 0x101   : > { %v843_v15 = vadd.f32 %v842_v7, %v794_v11 }
 0x103   : > { %v928_v20 = vadd.f32 %v1909_v28, %v843_v15 }
 0x106   : > { %v795_v13 = vpop.f32.mrf.mxu2  ;;  %v604_v17 = vpop.f32.mrf.mxu0 }
 0x107   : > { %v844_v14 = vpop.f32.mrf.mxu3  ;;  %v796_v16 = vadd.f32 %v795_v13, %v651_v12  ;;  %v653_v18 = vpop.f32.mrf.mxu1 }
 0x108   : > { %v654_v25 = vadd.f32 %v653_v18, %v604_v17 }
 0x109   : > { %v845_v19 = vadd.f32 %v844_v14, %v796_v16 }
 0x10b   : > { %v929_v21 = vadd.f32 %v1909_v28, %v845_v19 }
 0x10d   : > { %v1414_v22 = vpack.c.bf16 %v929_v21, %v928_v20 }
 0x10e   : > { %v798_v23 = vpop.f32.mrf.mxu2  ;;  %v606_v26 = vpop.f32.mrf.mxu0 }
 0x10f   : > { %v847_v24 = vpop.f32.mrf.mxu3  ;;  %1438 = vst [vmem:[%s1914_s20 + $0x18] sm:$0xff] %v1414_v22   ;;  %v655_v27 = vpop.f32.mrf.mxu1  ;;  %v799_v29 = vadd.f32 %v798_v23, %v654_v25 }
 0x110   : > { %v656_v30 = vadd.f32 %v655_v27, %v606_v26 }
 0x111   : > { %v848_v33 = vadd.f32 %v847_v24, %v799_v29 }
 0x113   : > { %v930_v38 = vadd.f32 %v1909_v28, %v848_v33 }
 0x116   : > { %v800_v31 = vpop.f32.mrf.mxu2  ;;  %v609_v35 = vpop.f32.mrf.mxu0 }
 0x117   : > { %v849_v32 = vpop.f32.mrf.mxu3  ;;  %v801_v34 = vadd.f32 %v800_v31, %v656_v30  ;;  %v658_v36 = vpop.f32.mrf.mxu1 }
 0x118   : > { %v659_v43 = vadd.f32 %v658_v36, %v609_v35 }
 0x119   : > { %v850_v37 = vadd.f32 %v849_v32, %v801_v34 }
 0x11b   : > { %v931_v39 = vadd.f32 %v1909_v28, %v850_v37 }
 0x11d   : > { %v1419_v40 = vpack.c.bf16 %v931_v39, %v930_v38 }
 0x11e   : > { %v803_v41 = vpop.f32.mrf.mxu2  ;;  %v611_v44 = vpop.f32.mrf.mxu0 }
 0x11f   : > { %v852_v42 = vpop.f32.mrf.mxu3  ;;  %1439 = vst [vmem:[%s1914_s20 + $0x20] sm:$0xff] %v1419_v40   ;;  %v660_v45 = vpop.f32.mrf.mxu1  ;;  %v804_v46 = vadd.f32 %v803_v41, %v659_v43 }
 0x120   : > { %v661_v47 = vadd.f32 %v660_v45, %v611_v44 }
 0x121   : > { %v853_v50 = vadd.f32 %v852_v42, %v804_v46 }
 0x123   : > { %v932_v55 = vadd.f32 %v1909_v28, %v853_v50 }
 0x126   : > { %v805_v48 = vpop.f32.mrf.mxu2  ;;  %v614_v52 = vpop.f32.mrf.mxu0 }
 0x127   : > { %v854_v49 = vpop.f32.mrf.mxu3  ;;  %v806_v51 = vadd.f32 %v805_v48, %v661_v47  ;;  %v663_v53 = vpop.f32.mrf.mxu1 }
 0x128   : > { %v664_v60 = vadd.f32 %v663_v53, %v614_v52 }
 0x129   : > { %v855_v54 = vadd.f32 %v854_v49, %v806_v51 }
 0x12b   : > { %v933_v56 = vadd.f32 %v1909_v28, %v855_v54 }
 0x12d   : > { %v1424_v57 = vpack.c.bf16 %v933_v56, %v932_v55 }
 0x12e   : > { %v808_v58 = vpop.f32.mrf.mxu2  ;;  %v616_v61 = vpop.f32.mrf.mxu0 }
 0x12f   : > { %v857_v59 = vpop.f32.mrf.mxu3  ;;  %1440 = vst [vmem:[%s1914_s20 + $0x28] sm:$0xff] %v1424_v57   ;;  %v665_v62 = vpop.f32.mrf.mxu1  ;;  %v809_v63 = vadd.f32 %v808_v58, %v664_v60 }
 0x130   : > { %v666_v0 = vadd.f32 %v665_v62, %v616_v61 }
 0x131   : > { %v858_v3 = vadd.f32 %v857_v59, %v809_v63 }
 0x133   : > { %v934_v8 = vadd.f32 %v1909_v28, %v858_v3 }
 0x136   : > { %v810_v1 = vpop.f32.mrf.mxu2  ;;  %v619_v5 = vpop.f32.mrf.mxu0 }
 0x137   : > { %v859_v2 = vpop.f32.mrf.mxu3  ;;  %v811_v4 = vadd.f32 %v810_v1, %v666_v0  ;;  %v668_v6 = vpop.f32.mrf.mxu1 }
 0x138   : > { %v669_v13 = vadd.f32 %v668_v6, %v619_v5 }
 0x139   : > { %v860_v7 = vadd.f32 %v859_v2, %v811_v4 }
 0x13b   : > { %v935_v9 = vadd.f32 %v1909_v28, %v860_v7 }
 0x13d   : > { %v1429_v10 = vpack.c.bf16 %v935_v9, %v934_v8 }
 0x13e   : > { %v813_v11 = vpop.f32.mrf.mxu2  ;;  %v621_v14 = vpop.f32.mrf.mxu0 }
 0x13f   : > { %v862_v12 = vpop.f32.mrf.mxu3  ;;  %1441 = vst [vmem:[%s1914_s20 + $0x30] sm:$0xff] %v1429_v10   ;;  %v670_v15 = vpop.f32.mrf.mxu1  ;;  %v814_v16 = vadd.f32 %v813_v11, %v669_v13 }
 0x140   : > { %v671_v17 = vadd.f32 %v670_v15, %v621_v14 }
 0x141   : > { %v863_v19 = vadd.f32 %v862_v12, %v814_v16 }
 0x143   : > { %v936_v23 = vadd.f32 %v1909_v28, %v863_v19 }
 0x146   : > { %v815_v18 = vpop.f32.mrf.mxu2 }
 0x147   : > { %v816_v20 = vadd.f32 %v815_v18, %v671_v17  ;;  %v864_v21 = vpop.f32.mrf.mxu3 }
 0x149   : > { %v865_v22 = vadd.f32 %v864_v21, %v816_v20 }
 0x14b   : > { %v937_v24 = vadd.f32 %v1909_v28, %v865_v22 }
 0x14d   : > { %v1434_v25 = vpack.c.bf16 %v937_v24, %v936_v23 }
 0x14f   : > { %1442 = vst [vmem:[%s1914_s20 + $0x38] sm:$0xff] %v1434_v25  }
 0x150   : > { %1646 = shalt.err (!%p1643_p13)
}
 0x151   : > { %s1712_s29 = smov 64   ;;  %s1713_s7 = smov 128  }
 0x152   : > { %s1714_s11 = smov 4  }
 0x153   : > { %1451 = dma.vmem_to_hbm [thread:$0]  (%p1826_p0), %s986_s9, 1024, %s988_s10, %s971_s15, %s1712_s29, %s1713_s7, %s1714_s11  }
 0x154 PF: > { %s1002_s20 = sand.u32 1, %s1685_s12   ;;  %p1465_p3 = pnand %p1113_p4, %p1830_p2 }
 0x155   : > { %s1003_s27 = scalar_lea.sflag [#allocation5], %s1002_s20 }
 0x156   : > { %p1466_p5 = pneg %p1465_p3 }
 0x158   : > { %1680 = dma.done.wait (%p1466_p5), %s1003_s27, 1024  }
 0x159   : > { %1682 = vsyncadd (%p1466_p5), %s1003_s27, 4294966272  ;;  %s20_s17 = sadd.s32 1, %s1705_s17   ;;  %s1987_s12 = smov %s1689_s13 }
 0x15a   : > { %p17_p1 = scmp.ge.s32.totalorder %s20_s17, 4   ;;  %s1988_s13 = smov %s1693_s14 }
 0x15b   : > { %s1989_s14 = smov %s1786_s24  ;;  %s1990_s15 = smov %s1701_s16 }
 0x15c   : > { %s1991_s16 = smov %s1993_s18  ;;  %19 = sbr.rel (!%p17_p1) target bundleno = 7 (0x7), region = 103 }
 0x161   :  { %1009 = vsyncpa [#allocation4], 1 }
 0x162   :  { %1011 = vsyncpa [#allocation4 + $0x1], 1 }
 0x163   :  { %1012 = vsyncpa [#allocation7], 1 }
 0x164   :  { %1014 = vsyncpa [#allocation7 + $0x1], 1 }
 0x165   :  { %1015 = vsyncpa [#allocation5], 1 }
 0x166   :  { %1017 = vsyncpa [#allocation5 + $0x1], 1 }

</bundles_post_ra>
